<compile_context>
chip_gen: v5e
topology: v5e:2x2
jax: 0.10.0
libtpu: 0.0.40
codegen_flags: <defaults>
</compile_context>

<pallas_src>
import jax
import jax.numpy as jnp
from jax.experimental import pallas as pl
from jax.experimental.pallas import tpu as pltpu


def _calibrator_kernel(w_ref, x_ref, o_ref):
    # w_ref: SMEM (1,1) scalar weight; x_ref / o_ref: VMEM tiles (same shape).
    w = w_ref[0, 0]
    t = jnp.maximum(w, jnp.zeros_like(w))   # relu(weight), scalar
    inv = 1.0 / t                           # exact scalar reciprocal (loop-invariant)
    # Broadcast multiply: one VALU-slot op per vreg (vs multi-op f32 divide).
    o_ref[...] = (x_ref[...] * inv).astype(o_ref.dtype)


def _device_tuning():
    """Per-generation (tile_bytes, vmem_limit_bytes or None, is_v7x)."""
    kind = ""
    try:
        kind = (getattr(jax.devices()[0], "device_kind", "") or "").lower()
    except Exception:
        pass
    if "v7" in kind:
        # 8 MiB tiles -> 4 bufs = 32 MiB, under v7x's 64 MiB physical VMEM.
        return 8 << 20, 40 << 20, True
    if "v6" in kind:
        return 8 << 20, 48 << 20, False
    if "v5" in kind:
        # v5e default scoped limit is 16 MiB; raise explicitly for 4 MiB tiles.
        return 4 << 20, 24 << 20, False
    return 2 << 20, None, False


def calibrator_forward(x, weight, *, max_tile_bytes=None):
    """x: any-shape float array. weight: (1, 1) float array."""
    orig_shape = x.shape
    dtype = x.dtype
    total = x.size
    itemsize = jnp.dtype(dtype).itemsize

    tile_bytes, vmem_limit, is_v7x = _device_tuning()
    if max_tile_bytes is not None:
        tile_bytes = max_tile_bytes

    x_flat = x.reshape(-1)
    rem = total % 128          # unaligned tail handled outside the kernel
    main = total - rem

    tail_out = None
    if rem or main == 0:
        t = jnp.maximum(weight[0, 0], jnp.zeros((), weight.dtype))
        tail_out = (x_flat[main:] / t).astype(dtype)
    if main == 0:
        return tail_out.reshape(orig_shape)

    # --- lane width: widest multiple of 128 (<=1024) dividing the prefix ----
    lanes = 128
    for cand in (1024, 512, 256):
        if main % cand == 0:
            lanes = cand
            break
    rows = main // lanes

    # --- row tile: dtype-native sublane multiple, masked partial tail -------
    sublane = max(8, 32 // itemsize)          # 8 f32 / 16 bf16 / 32 int8-fp8
    target_rows = max(sublane, tile_bytes // (lanes * itemsize))
    if rows <= target_rows:
        tile_r = rows                         # single full-extent block (always legal)
        grid = (1,)
    else:
        tile_r = max(sublane, (target_rows // sublane) * sublane)
        grid = (pl.cdiv(rows, tile_r),)       # Pallas masks the partial last block

    x2d = (x_flat[:main] if rem else x_flat).reshape(rows, lanes)

    def _build(dim_sem):
        cp_kwargs = dict(dimension_semantics=dim_sem)
        if vmem_limit is not None:
            cp_kwargs["vmem_limit_bytes"] = vmem_limit
        return pl.pallas_call(
            _calibrator_kernel,
            out_shape=jax.ShapeDtypeStruct((rows, lanes), dtype),
            grid=grid,
            in_specs=[
                pl.BlockSpec(memory_space=pltpu.SMEM),            # (1,1) weight scalar
                pl.BlockSpec((tile_r, lanes), lambda i: (i, 0)),   # input tile
            ],
            out_specs=pl.BlockSpec((tile_r, lanes), lambda i: (i, 0)),
            compiler_params=pltpu.CompilerParams(**cp_kwargs),
            cost_estimate=pl.CostEstimate(
                flops=main,
                transcendentals=0,
                bytes_accessed=2 * main * itemsize,
            ),
        )

    if is_v7x and grid[0] >= 2:
        # Engage both v7x TensorCores on this pure HBM-streaming op.
        try:
            out2d = jax.block_until_ready(
                _build((pltpu.CORE_PARALLEL,))(weight, x2d))
        except Exception:
            out2d = _build(("arbitrary",))(weight, x2d)
    else:
        out2d = _build(("arbitrary",))(weight, x2d)

    out_flat = out2d.reshape(-1)
    if rem:
        out_flat = jnp.concatenate([out_flat, tail_out])
    return out_flat.reshape(orig_shape)


if __name__ == "__main__":
    key = jax.random.PRNGKey(0)

    # Matches the PyTorch module: NCHW-like input [2, 4, 16, 16]
    x = jax.random.normal(key, (2, 4, 16, 16), dtype=jnp.float32)
    weight = jnp.ones((1, 1), dtype=jnp.float32)   # nn.Parameter(torch.ones(1, 1))

    out = jax.block_until_ready(calibrator_forward(x, weight))
    ref = x / jnp.maximum(weight, 0.0)
    assert out.shape == x.shape
    assert jnp.allclose(out, ref, rtol=1e-6, atol=1e-6), "mismatch vs reference"

    # Extra small checks: masked partial last block + unaligned-tail path.
    k1, k2 = jax.random.split(key)
    w2 = jnp.full((1, 1), 0.5, dtype=jnp.float32)

    x2 = jax.random.normal(k1, (20, 1024), dtype=jnp.float32)
    o2 = jax.block_until_ready(
        calibrator_forward(x2, w2, max_tile_bytes=8 * 1024 * 4))  # force cdiv grid
    assert jnp.allclose(o2, x2 / jnp.maximum(w2, 0.0), rtol=1e-6, atol=1e-6)

    x3 = jax.random.normal(k2, (5, 131), dtype=jnp.float32)       # 655 elems, 15-elem tail
    o3 = jax.block_until_ready(calibrator_forward(x3, w2))
    assert jnp.allclose(o3, x3 / jnp.maximum(w2, 0.0), rtol=1e-6, atol=1e-6)

    print("KERNEL_OK")
</pallas_src>

<mosaic_0001>
module attributes {stable_mosaic.version = 11 : i64} {
  func.func @_calibrator_kernel(%arg0: i32, %arg1: memref<1x1xf32, #tpu.memory_space<smem>>, %arg2: memref<2x1024xf32, #tpu.memory_space<vmem>>, %arg3: memref<2x1024xf32, #tpu.memory_space<vmem>>) attributes {dimension_semantics = [#tpu.dimension_semantics<arbitrary>], iteration_bounds = array<i64: 1>, scalar_prefetch = 0 : i64, scratch_operands = 0 : i64, tpu.core_type = #tpu.core_type<tc>, window_params = [{transform_indices = @transform_0, window_bounds = array<i64: 1, 1>}, {transform_indices = @transform_1, window_bounds = array<i64: 2, 1024>}, {transform_indices = @transform_2, window_bounds = array<i64: 2, 1024>}]} {
    %c0 = arith.constant 0 : index
    %c0_0 = arith.constant 0 : index
    %0 = memref.load %arg1[%c0, %c0_0] : memref<1x1xf32, #tpu.memory_space<smem>>
    %cst = arith.constant 0.000000e+00 : f32
    %1 = arith.maximumf %0, %cst : f32
    %cst_1 = arith.constant 1.000000e+00 : f32
    %2 = arith.divf %cst_1, %1 : f32
    %c0_2 = arith.constant 0 : index
    %c0_3 = arith.constant 0 : index
    %3 = vector.load %arg2[%c0_2, %c0_3] : memref<2x1024xf32, #tpu.memory_space<vmem>>, vector<2x1024xf32>
    %4 = vector.broadcast %2 : f32 to vector<2x1024xf32>
    %5 = arith.mulf %3, %4 : vector<2x1024xf32>
    %c0_4 = arith.constant 0 : index
    %c0_5 = arith.constant 0 : index
    %6 = vector.load %arg3[%c0_4, %c0_5] : memref<2x1024xf32, #tpu.memory_space<vmem>>, vector<2x1024xf32>
    tpu.vector_store %arg3[%c0_4, %c0_5], %5 {strides = array<i32>} : memref<2x1024xf32, #tpu.memory_space<vmem>>, vector<2x1024xf32>,
    return
  }
  func.func @transform_0(%arg0: i32) -> (i32, i32) {
    %c0_i32 = arith.constant 0 : i32
    %c0_i32_0 = arith.constant 0 : i32
    %c0_i32_1 = arith.constant 0 : i32
    return %c0_i32, %c0_i32_0 : i32, i32
  }
  func.func @transform_1(%arg0: i32) -> (i32, i32) {
    %c0_i32 = arith.constant 0 : i32
    %c0_i32_0 = arith.constant 0 : i32
    return %arg0, %c0_i32 : i32, i32
  }
  func.func @transform_2(%arg0: i32) -> (i32, i32) {
    %c0_i32 = arith.constant 0 : i32
    %c0_i32_0 = arith.constant 0 : i32
    return %arg0, %c0_i32 : i32, i32
  }
}

</mosaic_0001>

<bundles_post_ra>
// kernel: tpu_custom_call.1
= control target key start
LH: loop header
LB: loop body
LE: loop exit
PB: predicated region body
PF: predicated region fallthrough
CT: control target
= control target key end

     0   :  { %8 = vsyncpa [#allocation4], 0  ;;  %s155_s0 = inlined_call_operand.<no memory space> [shape: f32[1,1], index: 0, kind: input, shape index: {}]   ;;  %s156_s1 = inlined_call_operand.hbm [shape: f32[2,1024], index: 1, kind: input, shape index: {}]   ;;  %s157_s2 = inlined_call_operand.hbm [shape: f32[2,1024], index: 2, kind: output, shape index: {}]  }
   0x1   :  { %9 = vsyncpa [#allocation5], 0  ;;  %s17_s11 = sshll.u32 %s156_s1, 4  ;;  %s128_s12 = smov [#allocation3]   ;;  %s18_s11 = int_to_ptr.hbm [resolvable:$true] %s17_s11 }
   0x2   :  { %s19_s13 = sshll.u32 %s128_s12, 4  ;;  %s20_s13 = int_to_ptr.vmem [resolvable:$true] %s19_s13 }
   0x3   :  { %22 = dma.hbm_to_vmem [thread:$0]  %s18_s11, 256, %s20_s13, [#allocation4]  }
   0x4   :  { %124 = dma.done.wait [#allocation4], 256  }
   0x5   :  { %125 = vsyncadd [#allocation4], 4294967040  ;;  %s129_s14 = smov 0.0   ;;  %v45_v11 = vld [vmem:[#allocation3] sm:$0xff]  ;;  %v46_v12 = vld [vmem:[#allocation3 + $0x8] sm:$0xff]  ;;  %s59_s21 = sshll.u32 %s157_s2, 4  ;;  %s60_s21 = int_to_ptr.hbm [resolvable:$true] %s59_s21 }
   0x6   :  { %s28_s17 = smax.f32 %s129_s14, %s155_s0  ;;  %s130_s0 = smov [#allocation6]  }
   0x7   :  { %v29_v0 = vstv %s28_s17  ;;  %s57_s1 = sshll.u32 %s130_s0, 4  ;;  %s58_s1 = int_to_ptr.vmem [resolvable:$true] %s57_s1 }
   0x8   :  { %74 = vrcp.f32 %v29_v0  ;;  %v41_v3 = vand.u32 2147483648, %v29_v0  ;;  %vm35_vm0 = vweird.f32 %v29_v0  ;;  %v39_v5 = vand.u32 2147483647, %v29_v0 }
   0xa   :  { %v42_v7 = vor.u32 1.1754944e-38, %v41_v3  ;;  %vm40_vm3 = vcmp.eq.f32.partialorder %v39_v5, 8.507059e+37 }
   0xe   :  { %v75_v1 = vpop.eup %74 }
   0xf   :  { %v31_v2 = vmul.f32 %v75_v1, %v29_v0  ;;  %vm36_vm1 = vweird.f32 %v75_v1 }
  0x10   :  { %vm37_vm2 = vmor %vm35_vm0, %vm36_vm1 }
  0x11   :  { %v32_v4 = vsub.f32 1.0, %v31_v2 }
  0x13   :  { %v33_v6 = vmul.f32 %v75_v1, %v32_v4 }
  0x15   :  { %v34_v8 = vadd.f32 %v75_v1, %v33_v6 }
  0x17   :  { %v38_v9 = vsel %vm37_vm2, %v75_v1, %v34_v8 }
  0x18   :  { %v43_v10 = vsel %vm40_vm3, %v42_v7, %v38_v9 }
  0x19   :  { %69 = vpush %v43_v10 }
  0x4a   :  { %s70_s18 = spop %69 }
  0x4b   :  { %v47_v13 = vstv %s70_s18 }
  0x4c   :  { %v48_v14 = vmul.f32 %v47_v13, %v45_v11  ;;  %v49_v15 = vmul.f32 %v47_v13, %v46_v12 }
  0x4e   :  { %50 = vst [vmem:[#allocation6] sm:$0xff] %v48_v14 }
  0x4f   :  { %51 = vst [vmem:[#allocation6 + $0x8] sm:$0xff] %v49_v15 }
  0x50   :  { %62 = dma.vmem_to_hbm [thread:$0]  %s58_s1, 256, %s60_s21, [#allocation5]  }
  0x51   :  { %126 = dma.done.wait [#allocation5], 256  }
  0x52   :  { %127 = vsyncadd [#allocation5], 4294967040 }
  0x53   :  { %67 = vsyncpa [#allocation4], 1 }
  0x54   :  { %68 = vsyncpa [#allocation5], 1 }

</bundles_post_ra>
